<compile_context>
chip_gen: v7x
topology: tpu7x:2x2x1
jax: 0.10.0
libtpu: 0.0.40
codegen_flags: <defaults>
</compile_context>

<pallas_src>
import functools

import jax
import jax.numpy as jnp
from jax.experimental import pallas as pl
from jax.experimental.pallas import tpu as pltpu


# ----------------------------- hardware caps -----------------------------

def _tpu_caps():
    """(physical VMEM bytes, TensorCores per chip) with conservative fallbacks."""
    vmem_bytes = 64 * 1024 * 1024          # conservative default (v7x per-TC VMEM)
    try:
        vmem_bytes = int(pltpu.get_tpu_info().vmem_capacity_bytes)
    except Exception:                       # interpret mode / query unavailable
        pass
    # v7x exposes 64 MiB per TC and has 2 TCs/chip; v5e/v6e have 128 MiB and 1 TC.
    num_tc = 2 if vmem_bytes <= 64 * 1024 * 1024 else 1
    return vmem_bytes, num_tc


# ----------------------------- kernels -----------------------------

def _se_fused_kernel(x_ref, w1_ref, b1_ref, w2_ref, b2_ref, o_ref):
    """Single pass: full (bb, C, T) slab resident. mean -> W1/ReLU -> W2/sigmoid -> gate.

    No full-slab f32 temporary: f32 accumulation lives inside the reduce, the
    gating multiply stays in x's native dtype, only the (bb, C) gate is cast.
    """
    t = x_ref.shape[2]                                          # block spans the full T
    mean = jnp.sum(x_ref[...], axis=2, dtype=jnp.float32) * (1.0 / t)   # (bb, C) f32
    h = jnp.dot(mean, w1_ref[...], preferred_element_type=jnp.float32) + b1_ref[...]
    h = jnp.maximum(h, 0.0)                                     # (bb, Bott)
    s = jax.nn.sigmoid(
        jnp.dot(h, w2_ref[...], preferred_element_type=jnp.float32) + b2_ref[...])
    s = s.astype(o_ref.dtype)                                   # tiny (bb, C) cast only
    o_ref[...] = x_ref[...] * s[:, :, None]


def _se_sum_kernel(x_ref, sum_ref, acc_ref, *, rem):
    """Two-pass path, pass 1: tiled f32 sum over T. Only the tail tile is masked."""
    ti = pl.program_id(1)
    last = pl.num_programs(1) - 1

    @pl.when(ti == 0)
    def _():
        acc_ref[...] = jnp.zeros_like(acc_ref)

    if rem == 0:
        acc_ref[...] += jnp.sum(x_ref[...], axis=2, dtype=jnp.float32)
    else:
        @pl.when(ti != last)
        def _():
            acc_ref[...] += jnp.sum(x_ref[...], axis=2, dtype=jnp.float32)

        @pl.when(ti == last)
        def _():
            x = x_ref[...].astype(jnp.float32)                  # (1, C, t1)
            col = jax.lax.broadcasted_iota(jnp.int32, x.shape, 2)
            x = jnp.where(col < rem, x, 0.0)                    # mask padded tail
            acc_ref[...] += jnp.sum(x, axis=2)

    @pl.when(ti == last)
    def _():
        sum_ref[...] = acc_ref[...]                             # lane-dense (1, C)


def _se_apply_kernel(x_ref, s_ref, o_ref):
    """Two-pass path, pass 2: out = x * gate, multiply in x's native dtype."""
    s = s_ref[...].astype(o_ref.dtype)                          # (1, C) gate, tiny cast
    o_ref[...] = x_ref[...] * s[:, :, None]


# ----------------------------- wrapper -----------------------------

def se_module(x, w1, b1, w2, b2, *, force_two_pass=False, t_tile=None):
    """ECAPA SEModule forward.

    x:  (B, C, T)
    w1: (Bott, C)   Conv1d(C -> Bott, k=1) weight (kernel dim squeezed)
    b1: (Bott,) or (Bott, 1)
    w2: (C, Bott)
    b2: (C,) or (C, 1)
    """
    B, C, T = x.shape
    Bott = w1.shape[0]
    itemsize = x.dtype.itemsize

    vmem_bytes, num_tc = _tpu_caps()
    vmem_limit = int(vmem_bytes * 0.85)            # headroom for Mosaic scratch/semaphores
    block_budget = int(vmem_bytes * 0.625)         # double-buffered data blocks

    # Row-vector matmul layout: (bb, C) @ (C, Bott) keeps the contraction operand
    # lane-major and avoids 1-column MXU operands.
    w1t = jnp.transpose(w1)                                     # (C, Bott)
    w2t = jnp.transpose(w2)                                     # (Bott, C)
    b1r = jnp.reshape(b1, (1, Bott)).astype(jnp.float32)        # (1, Bott)
    b2r = jnp.reshape(b2, (1, C)).astype(jnp.float32)           # (1, C)

    w_bytes = (w1t.size + w2t.size) * w1t.dtype.itemsize + (b1r.size + b2r.size) * 4
    common_params = dict(vmem_limit_bytes=vmem_limit)

    # ---- fused-path feasibility: double-buffered x + out slab per batch element ----
    fused_budget = max(block_budget - 2 * w_bytes, 0)
    per_batch_bytes = 4 * C * T * itemsize
    fit_bb = fused_budget // per_batch_bytes

    # ---- two-pass tile sizes (pass 1 streams only x -> ~2x bigger tiles than pass 2) ----
    def _pick_tile(streams):
        fit = block_budget // (streams * C * itemsize)
        if T <= 128 or fit >= T:
            return T
        return int(max(128, (min(fit, T) // 128) * 128))        # lane-dense tiles

    if t_tile is not None:
        t1 = t2 = int(min(t_tile, T))
    else:
        t1 = _pick_tile(2)                                      # pass 1: x only
        t2 = _pick_tile(4)                                      # pass 2: x + out
    n_t1 = pl.cdiv(T, t1)
    n_t2 = pl.cdiv(T, t2)

    two_pass = force_two_pass or fit_bb < 1
    if not two_pass and num_tc >= 2 and B < num_tc and n_t2 >= 2:
        # A 1-step fused grid would idle one TensorCore; the T-parallel grid keeps both busy.
        two_pass = True

    if not two_pass:
        # ---------------- single-pass fused path ----------------
        bb = int(min(fit_bb, B))                                # biggest block that fits wins
        if num_tc >= 2 and B >= num_tc and pl.cdiv(B, bb) < num_tc:
            bb = int(pl.cdiv(B, num_tc))                        # keep all TCs busy (v7x only)
        grid = (pl.cdiv(B, bb),)
        cost_fused = pl.CostEstimate(
            flops=2 * B * C * T + 4 * B * C * Bott,
            transcendentals=B * C,
            bytes_accessed=2 * B * C * T * itemsize + w_bytes,
        )
        return pl.pallas_call(
            _se_fused_kernel,
            out_shape=jax.ShapeDtypeStruct((B, C, T), x.dtype),
            grid_spec=pltpu.PrefetchScalarGridSpec(
                num_scalar_prefetch=0,
                grid=grid,
                in_specs=[
                    pl.BlockSpec((bb, C, T), lambda i: (i, 0, 0)),   # x
                    pl.BlockSpec((C, Bott), lambda i: (0, 0)),       # w1^T (replicated)
                    pl.BlockSpec((1, Bott), lambda i: (0, 0)),       # b1
                    pl.BlockSpec((Bott, C), lambda i: (0, 0)),       # w2^T
                    pl.BlockSpec((1, C), lambda i: (0, 0)),          # b2
                ],
                out_specs=pl.BlockSpec((bb, C, T), lambda i: (i, 0, 0)),
            ),
            compiler_params=pltpu.CompilerParams(
                dimension_semantics=("parallel",), **common_params),
            cost_estimate=cost_fused,
        )(x, w1t, b1r, w2t, b2r)

    # ---------------- two-pass path (large C*T, or B==1 on a 2-TC chip) ----------------
    rem = T % t1

    # Pass 1: per-(batch, channel) f32 sums, lane-dense (B, C).
    sums = pl.pallas_call(
        functools.partial(_se_sum_kernel, rem=rem),
        out_shape=jax.ShapeDtypeStruct((B, C), jnp.float32),
        grid_spec=pltpu.PrefetchScalarGridSpec(
            num_scalar_prefetch=0,
            grid=(B, n_t1),
            in_specs=[pl.BlockSpec((1, C, t1), lambda b, t: (b, 0, t))],   # x
            out_specs=pl.BlockSpec((1, C), lambda b, t: (b, 0)),
            scratch_shapes=[pltpu.VMEM((1, C), jnp.float32)],              # sum accumulator
        ),
        compiler_params=pltpu.CompilerParams(
            dimension_semantics=("parallel", "arbitrary"), **common_params),
        cost_estimate=pl.CostEstimate(
            flops=B * C * T, transcendentals=0,
            bytes_accessed=B * C * T * itemsize + B * C * 4),
    )(x)

    # Tiny bottleneck MLP + sigmoid in plain XLA (negligible FLOPs: B*C*Bott).
    mean = sums * (1.0 / T)                                                 # global-T mean
    h = jnp.maximum(jnp.dot(mean, w1t.astype(jnp.float32)) + b1r, 0.0)      # (B, Bott)
    gate = jax.nn.sigmoid(jnp.dot(h, w2t.astype(jnp.float32)) + b2r)        # (B, C) f32

    # Pass 2: out = x * gate, tiled over (B, T); gate block resident across T.
    return pl.pallas_call(
        _se_apply_kernel,
        out_shape=jax.ShapeDtypeStruct((B, C, T), x.dtype),
        grid_spec=pltpu.PrefetchScalarGridSpec(
            num_scalar_prefetch=0,
            grid=(B, n_t2),
            in_specs=[
                pl.BlockSpec((1, C, t2), lambda b, t: (b, 0, t)),   # x
                pl.BlockSpec((1, C), lambda b, t: (b, 0)),          # gate (lane-dense)
            ],
            out_specs=pl.BlockSpec((1, C, t2), lambda b, t: (b, 0, t)),
        ),
        compiler_params=pltpu.CompilerParams(
            dimension_semantics=("parallel", "parallel"), **common_params),
        cost_estimate=pl.CostEstimate(
            flops=B * C * T, transcendentals=0,
            bytes_accessed=2 * B * C * T * itemsize + B * C * 4),
    )(x, gate)


# ----------------------------- reference & test -----------------------------

def _reference(x, w1, b1, w2, b2):
    mean = jnp.mean(x, axis=2, keepdims=True)                          # (B, C, 1)
    h = jnp.einsum('oc,bci->boi', w1, mean) + b1.reshape(1, -1, 1)     # (B, Bott, 1)
    h = jnp.maximum(h, 0.0)
    s = jnp.einsum('co,boi->bci', w2, h) + b2.reshape(1, -1, 1)        # (B, C, 1)
    s = jax.nn.sigmoid(s)
    return x * s


if __name__ == "__main__":
    key = jax.random.PRNGKey(0)

    def make_inputs(k, B, C, T, Bott):
        kx, k1, k2, k3, k4 = jax.random.split(k, 5)
        x = jax.random.normal(kx, (B, C, T), dtype=jnp.float32)
        w1 = jax.random.normal(k1, (Bott, C), dtype=jnp.float32) * 0.1
        b1 = jax.random.normal(k2, (Bott,), dtype=jnp.float32) * 0.1
        w2 = jax.random.normal(k3, (C, Bott), dtype=jnp.float32) * 0.1
        b2 = jax.random.normal(k4, (C,), dtype=jnp.float32) * 0.1
        return x, w1, b1, w2, b2

    k_a, k_b, k_c = jax.random.split(key, 3)

    # 1) Small shapes -> single-pass fused path (batch=2, channels=16, seq=32, bottleneck=8).
    args = make_inputs(k_a, 2, 16, 32, 8)
    out = jax.block_until_ready(se_module(*args))
    ref = _reference(*args)
    assert out.shape == args[0].shape
    assert jnp.allclose(out, ref, atol=1e-5, rtol=1e-5), "single-pass mismatch vs reference"

    # 2) Two-pass path (T tiled, masked tail tile only), as used when (C, T) slabs exceed VMEM.
    args2 = make_inputs(k_b, 3, 16, 320, 8)
    out2 = jax.block_until_ready(se_module(*args2, force_two_pass=True, t_tile=128))
    ref2 = _reference(*args2)
    assert out2.shape == args2[0].shape
    assert jnp.allclose(out2, ref2, atol=1e-5, rtol=1e-5), "two-pass mismatch vs reference"

    # 3) B == 1: exercises either the 1-step fused grid (single-TC chips) or the
    #    two-TC reroute; both must match the reference.
    args3 = make_inputs(k_c, 1, 32, 64, 8)
    out3 = jax.block_until_ready(se_module(*args3))
    ref3 = _reference(*args3)
    assert jnp.allclose(out3, ref3, atol=1e-5, rtol=1e-5), "B==1 mismatch vs reference"

    print("KERNEL_OK")
</pallas_src>

<mosaic_0001>
module attributes {stable_mosaic.version = 11 : i64} {
  func.func @_se_fused_kernel(%arg0: i32, %arg1: memref<1x16x32xf32, #tpu.memory_space<vmem>>, %arg2: memref<16x8xf32, #tpu.memory_space<vmem>>, %arg3: memref<1x8xf32, #tpu.memory_space<vmem>>, %arg4: memref<8x16xf32, #tpu.memory_space<vmem>>, %arg5: memref<1x16xf32, #tpu.memory_space<vmem>>, %arg6: memref<1x16x32xf32, #tpu.memory_space<vmem>>) attributes {dimension_semantics = [#tpu.dimension_semantics<parallel>], iteration_bounds = array<i64: 2>, scalar_prefetch = 0 : i64, scratch_operands = 0 : i64, tpu.core_type = #tpu.core_type<tc>, window_params = [{transform_indices = @transform_0, window_bounds = array<i64: 1, 16, 32>}, {pipeline_mode = #tpu.pipeline_mode<synchronous>, transform_indices = @transform_1, window_bounds = array<i64: 16, 8>}, {pipeline_mode = #tpu.pipeline_mode<synchronous>, transform_indices = @transform_2, window_bounds = array<i64: 1, 8>}, {pipeline_mode = #tpu.pipeline_mode<synchronous>, transform_indices = @transform_3, window_bounds = array<i64: 8, 16>}, {pipeline_mode = #tpu.pipeline_mode<synchronous>, transform_indices = @transform_4, window_bounds = array<i64: 1, 16>}, {transform_indices = @transform_5, window_bounds = array<i64: 1, 16, 32>}]} {
    %c0 = arith.constant 0 : index
    %c0_0 = arith.constant 0 : index
    %c0_1 = arith.constant 0 : index
    %0 = vector.load %arg1[%c0, %c0_0, %c0_1] : memref<1x16x32xf32, #tpu.memory_space<vmem>>, vector<1x16x32xf32>
    %cst = arith.constant dense<0.000000e+00> : vector<1x16xf32>
    %1 = vector.multi_reduction <add>, %0, %cst [2] : vector<1x16x32xf32> to vector<1x16xf32>
    %cst_2 = arith.constant 3.125000e-02 : f32
    %2 = vector.broadcast %cst_2 : f32 to vector<1x16xf32>
    %3 = arith.mulf %1, %2 : vector<1x16xf32>
    %c0_3 = arith.constant 0 : index
    %c0_4 = arith.constant 0 : index
    %4 = vector.load %arg2[%c0_3, %c0_4] : memref<16x8xf32, #tpu.memory_space<vmem>>, vector<16x8xf32>
    %cst_5 = arith.constant dense<0.000000e+00> : vector<1x8xf32>
    %5 = tpu.matmul %3, %4, %cst_5 {dimension_numbers = #tpu.dot_dimension_numbers<[1], [0], [0], [1], [0, 0, 1, 1], [], []>} : vector<1x16xf32>, vector<16x8xf32>, vector<1x8xf32> -> vector<1x8xf32>
    %c0_6 = arith.constant 0 : index
    %c0_7 = arith.constant 0 : index
    %6 = vector.load %arg3[%c0_6, %c0_7] : memref<1x8xf32, #tpu.memory_space<vmem>>, vector<1x8xf32>
    %7 = arith.addf %5, %6 : vector<1x8xf32>
    %cst_8 = arith.constant 0.000000e+00 : f32
    %8 = vector.broadcast %cst_8 : f32 to vector<1x8xf32>
    %9 = arith.maximumf %7, %8 : vector<1x8xf32>
    %c0_9 = arith.constant 0 : index
    %c0_10 = arith.constant 0 : index
    %10 = vector.load %arg4[%c0_9, %c0_10] : memref<8x16xf32, #tpu.memory_space<vmem>>, vector<8x16xf32>
    %cst_11 = arith.constant dense<0.000000e+00> : vector<1x16xf32>
    %11 = tpu.matmul %9, %10, %cst_11 {dimension_numbers = #tpu.dot_dimension_numbers<[1], [0], [0], [1], [0, 0, 1, 1], [], []>} : vector<1x8xf32>, vector<8x16xf32>, vector<1x16xf32> -> vector<1x16xf32>
    %c0_12 = arith.constant 0 : index
    %c0_13 = arith.constant 0 : index
    %12 = vector.load %arg5[%c0_12, %c0_13] : memref<1x16xf32, #tpu.memory_space<vmem>>, vector<1x16xf32>
    %13 = arith.addf %11, %12 : vector<1x16xf32>
    %14 = arith.negf %13 : vector<1x16xf32>
    %15 = math.exp %14 : vector<1x16xf32>
    %cst_14 = arith.constant 1.000000e+00 : f32
    %16 = vector.broadcast %cst_14 : f32 to vector<1x16xf32>
    %17 = arith.addf %16, %15 : vector<1x16xf32>
    %18 = arith.divf %16, %17 : vector<1x16xf32>
    %c0_15 = arith.constant 0 : index
    %c0_16 = arith.constant 0 : index
    %c0_17 = arith.constant 0 : index
    %19 = vector.load %arg1[%c0_15, %c0_16, %c0_17] : memref<1x16x32xf32, #tpu.memory_space<vmem>>, vector<1x16x32xf32>
    %20 = vector.shape_cast %18 : vector<1x16xf32> to vector<1x16x1xf32>
    %21 = vector.broadcast %20 : vector<1x16x1xf32> to vector<1x16x32xf32>
    %22 = arith.mulf %19, %21 : vector<1x16x32xf32>
    %c0_18 = arith.constant 0 : index
    %c0_19 = arith.constant 0 : index
    %c0_20 = arith.constant 0 : index
    %23 = vector.load %arg6[%c0_18, %c0_19, %c0_20] : memref<1x16x32xf32, #tpu.memory_space<vmem>>, vector<1x16x32xf32>
    tpu.vector_store %arg6[%c0_18, %c0_19, %c0_20], %22 {strides = array<i32>} : memref<1x16x32xf32, #tpu.memory_space<vmem>>, vector<1x16x32xf32>,
    return
  }
  func.func @transform_0(%arg0: i32) -> (i32, i32, i32) {
    %c0_i32 = arith.constant 0 : i32
    %c0_i32_0 = arith.constant 0 : i32
    %c0_i32_1 = arith.constant 0 : i32
    return %arg0, %c0_i32, %c0_i32_0 : i32, i32, i32
  }
  func.func @transform_1(%arg0: i32) -> (i32, i32) {
    %c0_i32 = arith.constant 0 : i32
    %c0_i32_0 = arith.constant 0 : i32
    %c0_i32_1 = arith.constant 0 : i32
    return %c0_i32, %c0_i32_0 : i32, i32
  }
  func.func @transform_2(%arg0: i32) -> (i32, i32) {
    %c0_i32 = arith.constant 0 : i32
    %c0_i32_0 = arith.constant 0 : i32
    %c0_i32_1 = arith.constant 0 : i32
    return %c0_i32, %c0_i32_0 : i32, i32
  }
  func.func @transform_3(%arg0: i32) -> (i32, i32) {
    %c0_i32 = arith.constant 0 : i32
    %c0_i32_0 = arith.constant 0 : i32
    %c0_i32_1 = arith.constant 0 : i32
    return %c0_i32, %c0_i32_0 : i32, i32
  }
  func.func @transform_4(%arg0: i32) -> (i32, i32) {
    %c0_i32 = arith.constant 0 : i32
    %c0_i32_0 = arith.constant 0 : i32
    %c0_i32_1 = arith.constant 0 : i32
    return %c0_i32, %c0_i32_0 : i32, i32
  }
  func.func @transform_5(%arg0: i32) -> (i32, i32, i32) {
    %c0_i32 = arith.constant 0 : i32
    %c0_i32_0 = arith.constant 0 : i32
    %c0_i32_1 = arith.constant 0 : i32
    return %arg0, %c0_i32, %c0_i32_0 : i32, i32, i32
  }
}

</mosaic_0001>

<bundles_post_ra>
// kernel: tpu_custom_call.1
= control target key start
LH: loop header
LB: loop body
LE: loop exit
PB: predicated region body
PF: predicated region fallthrough
CT: control target
= control target key end

     0   :  { %10 = vsyncpa [#allocation3], 0  ;;  %s952_s0 = inlined_call_operand.hbm [shape: f32[2,16,32], index: 0, kind: input, shape index: {}]   ;;  %s953_s1 = inlined_call_operand.vmem [shape: f32[16,8], index: 1, kind: input, shape index: {}]   ;;  %s954_s2 = inlined_call_operand.vmem [shape: f32[1,8], index: 2, kind: input, shape index: {}]   ;;  %s955_s3 = inlined_call_operand.vmem [shape: f32[8,16], index: 3, kind: input, shape index: {}]   ;;  %s956_s4 = inlined_call_operand.vmem [shape: f32[1,16], index: 4, kind: input, shape index: {}]   ;;  %s957_s5 = inlined_call_operand.hbm [shape: f32[2,16,32], index: 5, kind: output, shape index: {}]  }
   0x1   :  { %12 = vsyncpa [#allocation3 + $0x1], 0 }
   0x2   :  { %13 = vsyncpa [#allocation4], 0 }
   0x3   :  { %15 = vsyncpa [#allocation4 + $0x1], 0  ;;  %s763_s18 = smov 0   ;;  %s765_s19 = smov 0  }
   0x4   :  { %s767_s20 = smov 0   ;;  %s769_s21 = smov 0  }
   0x5 LB: > { %s784_s22 = sadd.s32 4294967295, %s722_s21   ;;  %s530_s23 = sadd.s32 4294967294, %s722_s21   ;;  %s722_s21 = sphi %s769_s21, %s970_s21   ;;  %s718_s20 = sphi %s767_s20, %s969_s20   ;;  %s714_s19 = sphi %s765_s19, %s968_s19   ;;  %s710_s18 = sphi %s763_s18, %s967_s18  }
   0x6   : > { %s788_s24 = sadd.s32 1, %s722_s21   ;;  %s28_s25 = sadd.s32 1, %s718_s20 }
   0x7   : > { %s25_s26 = ssub.s32 %s722_s21, %s788_s24  ;;  %p35_p0 = scmp.ne.s32.totalorder %s718_s20, %s714_s19 }
   0x8   : > { %p26_p1 = scmp.eq.s32.totalorder %s25_s26, 0  ;;  %p36_p2 = scmp.eq.s32.totalorder %s722_s21, 0 }
   0x9   : > { %p41_p3 = scmp.ne.s32.totalorder %s714_s19, %s710_s18  ;;  %p42_p4 = scmp.eq.s32.totalorder %s784_s22, 0 }
   0xa   : > { %s800_s27 = scalar_select %p26_p1, %s718_s20, %s28_s25  }
   0xb   : > { %p802_p5 = por %p36_p2, %p35_p0  ;;  %p806_p6 = por %p42_p4, %p41_p3 }
   0xc   : > { %p149_p7 = scmp.eq.s32.totalorder %s784_s22, 1  ;;  %p155_p8 = scmp.eq.s32.totalorder %s530_s23, 1 }
   0xd   : > { %p581_p10 = scmp.lt.s32.totalorder %s722_s21, 2  ;;  %s187_s7 = sand.u32 1, %s718_s20  }
   0xe   : > { %p813_p11 = por %p149_p7, %p35_p0  ;;  %p817_p12 = por %p155_p8, %p41_p3 }
   0xf   : > { %s547_s8 = sshll.u32 %s722_s21, 8  ;;  %s533_s9 = sshll.u32 %s187_s7, 4 }
  0x10   : > { %s961_s30 = scalar_select %p813_p11, 1, 0 }
  0x11   : > { %s962_s6 = scalar_select %p817_p12, 1, 0 }
  0x12   : > { %s826_s12 = scalar_lea.hbm %s952_s0, %s547_s8  ;;  %s191_s13 = scalar_lea.vmem [#allocation2], %s533_s9 }
  0x13   : > { %s198_s14 = sshll.u32 %s191_s13, 4  ;;  %p830_p13 = pnand %p581_p10, %p802_p5  ;;  %s834_s14 = int_to_ptr.vmem [resolvable:$true] %s198_s14 }
  0x14   : > { %s836_s16 = scalar_lea.sflag [#allocation3], %s187_s7  ;;  %s626_s17 = scalar_lea.hbm %s826_s12, 256 }
  0x15   : > { %p627_p0 = scmp.ne.s32.totalorder %s826_s12, %s626_s17  ;;  %p628_p1 = pneg %p830_p13 }
  0x16   : > { %s631_s26 = scalar_lea.hbm %s952_s0, 512  ;;  %p632_p4 = scmp.lt.u32.totalorder %s826_s12, %s952_s0 }
  0x17   : > { %p629_p2 = pnand %p628_p1, %p627_p0  ;;  %p633_p5 = scmp.lt.u32.totalorder %s631_s26, %s626_s17 }
  0x18   : > { %p635_p8 = scmp.lt.u32.totalorder %s626_s17, %s826_s12 }
  0x19   : > { %p630_p3 = pneg %p629_p2  ;;  %p634_p7 = por %p633_p5, %p632_p4 }
  0x1b   : > { %p636_p10 = por %p635_p8, %p634_p7 }
  0x1d   : > { %p637_p9 = pnand %p636_p10, %p630_p3 }
  0x1f   : > { %640 = shalt.err (!%p637_p9)
}
  0x20   : > { %s641_s7 = scalar_lea.vmem %s834_s14, 256  ;;  %s724_s9 = smov [#allocation2]  }
  0x21   : > { %p642_p0 = scmp.ne.s32.totalorder %s834_s14, %s641_s7  ;;  %s646_s10 = sshll.u32 %s724_s9, 4  ;;  %s647_s10 = int_to_ptr.vmem [resolvable:$false] %s646_s10 }
  0x22   : > { %s648_s11 = scalar_lea.vmem %s647_s10, 512  ;;  %p649_p11 = scmp.lt.s32.totalorder %s834_s14, %s647_s10 }
  0x23   : > { %p644_p2 = pnand %p642_p0, %p628_p1  ;;  %p650_p4 = scmp.lt.s32.totalorder %s648_s11, %s641_s7 }
  0x25   : > { %p645_p12 = pneg %p644_p2  ;;  %p651_p5 = por %p650_p4, %p649_p11 }
  0x27   : > { %p652_p7 = pnand %p651_p5, %p645_p12 }
  0x29   : > { %655 = shalt.err (!%p652_p7)
}
  0x2a   : > { %s725_s13 = smov 128   ;;  %s726_s17 = smov 8  }
  0x2b   : > { %576 = dma.hbm_to_vmem [thread:$0]  (!%p830_p13), %s826_s12, 256, %s834_s14, %s836_s16, %s725_s13, %s725_s13, %s726_s17  }
  0x2c   : > { %p536_p9 = scmp.ge.s32.totalorder %s722_s21, 1  ;;  %p206_p1 = scmp.lt.s32.totalorder %s722_s21, 3 }
  0x2e   : > { %p207_p3 = pnand %p536_p9, %p206_p1 }
  0x2f   : > { %s867_s23 = sand.u32 (!%p207_p3), 1, %s714_s19  }
  0x30   : > { %210 = sbr.rel (%p207_p3) target bundleno = 803 (0x323), region = 40  ;;  %s537_s25 = sshll.u32 (!%p207_p3), %s867_s23, 4 }
  0x31   : > { %s213_s26 = scalar_lea.sflag (!%p207_p3), [#allocation3], %s867_s23  ;;  %s216_s28 = scalar_lea.vmem (!%p207_p3), [#allocation2], %s537_s25 }
  0x37   : > { %701 = dma.done.wait (%p806_p6), %s213_s26, 256  }
  0x38   : > { %703 = vsyncadd (%p806_p6), %s213_s26, 4294967040  ;;  %vm245_vm0 = vcmask 261120   ;;  %v243_v0 = vld [vmem:[%s216_s28] sm:$0xff]  ;;  %v877_v1 = vld [vmem:[%s216_s28 + $0x8] sm:$0xff]  ;;  %v727_v7 = vmov 0.0|0.0   ;;  %vm728_vm1 = vmmov 0   ;;  %v259_v9 = vlaneseq }
  0x39   : > { %v246_v2 = vsel %vm245_vm0, %v243_v0, 0.0  ;;  %v249_v3 = vsel %vm245_vm0, %v877_v1, 0.0  ;;  %v254_v4 = vld [vmem:[%s953_s1] sm:$0xff]  ;;  %v255_v5 = vld [vmem:[%s953_s1 + $0x8] sm:$0xff]  ;;  %566 = vmatprep.subr.bf16.mxu0 %v727_v7  ;;  %v729_v8 = vmov 0.0   ;;  %vm270_vm2 = vcmask 130112  }
  0x3a   : > { %247 = vadd.xlane.f32.xlu0 %v246_v2  ;;  %v567_v6 = vpack.c.bf16 %v255_v5, %v254_v4  ;;  %558 = vmatprep.mubr.msk.f32.mxu0 %vm728_vm1, %v729_v8  ;;  %v260_v10 = vand.u32 127, %v259_v9  ;;  %v262_v11 = vshrl.u32 %v259_v9, 7  ;;  %vm272_vm3 = vcmask 130048   ;;  %v346_v22 = vld [vmem:[%s955_s3] sm:$0xff]  ;;  %s242_s13 = scalar_lea.vmem [#allocation5], %s537_s25  ;;  %s548_s26 = sshll.u32 %s784_s22, 8 }
  0x3b   : > { %561 = vmatprep.subr.mxu1 %v729_v8  ;;  %563 = vmatprep.mubr.msk.f32.mxu1 %vm728_vm1, %v729_v8  ;;  %v256_v23 = vld [vmem:[%s954_s2] sm:$0x1]  ;;  %vm348_vm4 = vcmask 64512   ;;  %s457_s17 = sshll.u32 %s242_s13, 4  ;;  %s906_s14 = scalar_lea.hbm %s957_s5, %s548_s26  ;;  %s900_s17 = int_to_ptr.vmem [resolvable:$true] %s457_s17 }
  0x3c   : > { %568 = vmatpush3.bf16.msra.mxu0 %v567_v6  ;;  %v265_v12 = vadd.s32 4294967288, %v260_v10  ;;  %v263_v14 = vsub.s32 %v260_v10, %v262_v11  ;;  %562 = vmatpush3.msra.mxu1 %v346_v22  ;;  %v347_v28 = vld [vmem:[%s956_s4] sm:$0x1]  ;;  %v430_v35 = vsub.s32 0, %v262_v11  ;;  %s444_s25 = scalar_lea.sflag [#allocation4], %s867_s23  ;;  %s656_s15 = scalar_lea.vmem %s900_s17, 256 }
  0x3d   : > { %p657_p6 = scmp.ne.s32.totalorder %s900_s17, %s656_s15  ;;  %p964_p11 = scmp.ne.s32.totalorder %s961_s30, 0 }
  0x3e   : > { %250 = vadd.xlane.f32.xlu0 %v249_v3  ;;  %v268_v16 = vsub.s32 %v265_v12, %v262_v11  ;;  %s730_s22 = smov [#allocation5]  }
  0x3f   : > { %p658_p12 = pnand %p657_p6, %p964_p11  ;;  %s660_s16 = sshll.u32 %s730_s22, 4  ;;  %s661_s16 = int_to_ptr.vmem [resolvable:$false] %s660_s16 }
  0x40   : > { %s662_s29 = scalar_lea.vmem %s661_s16, 512  ;;  %p663_p8 = scmp.lt.s32.totalorder %s900_s17, %s661_s16 }
  0x41   : > { %p659_p13 = pneg %p658_p12  ;;  %p664_p10 = scmp.lt.s32.totalorder %s662_s29, %s656_s15 }
  0x43   : > { %p665_p0 = por %p664_p10, %p663_p8 }
  0x45   : > { %p666_p2 = pnand %p665_p0, %p659_p13 }
  0xc7   : > { %v248_v13 = vpop.xlane.xlu0 %247 }
  0xc8   : > { %v252_v15 = vmul.f32 0.03125, %v248_v13 }
  0xca   : > { %v264_v19 = vrot.slane %v252_v15, %v263_v14 }
  0xcb   : > { %v251_v17 = vpop.xlane.xlu0 %250 }
  0xcc   : > { %v253_v18 = vmul.f32 0.03125, %v251_v17 }
  0xce   : > { %v269_v20 = vrot.slane %v253_v18, %v268_v16 }
  0xd0   : > { %v271_v21 = vsel %vm270_vm2, %v269_v20, %v264_v19 }
  0xd1   : > { %559 = vmatmul.mubr.msk.f32.vlgmr.msra.gmra.mrb[0].mxu0 %vm272_vm3, %v271_v21 }
 0x1a4   : > { %v341_v24 = vpop.f32.mrb[0].mxu0 }
 0x1a5   : > { %v342_v25 = vadd.f32 %v341_v24, %v256_v23  ;;  %v560_v26 = vpop.f32.mrb[1].mxu0 }
 0x1a7   : > { %v345_v27 = vmax.f32 %v342_v25, 0.0 }
 0x1a9   : > { %564 = vmatmul.mubr.msk.f32.vlgmr.msra.gmra.mrb[0].mxu1 %vm348_vm4, %v345_v27 }
 0x27c   : > { %v418_v29 = vpop.f32.mrb[0].mxu1 }
 0x27d   : > { %v419_v30 = vadd.f32 %v418_v29, %v347_v28  ;;  %v565_v31 = vpop.f32.mrb[1].mxu1 }
 0x27f   : > { %v541_v32 = vmul.f32 -1.442695, %v419_v30 }
 0x281   : > { %622 = vpow2.f32 %v541_v32 }
 0x28b   : > { %v623_v33 = vpop.eup %622 }
 0x28c   : > { %v425_v34 = vadd.f32 1.0, %v623_v33 }
 0x28e   : > { %624 = vrcp.f32 %v425_v34 }
 0x298   : > { %v625_v36 = vpop.eup %624 }
 0x299   : > { %v431_v37 = vrot.slane %v625_v36, %v430_v35 }
 0x29b   : > { %433 = vbcast.lane.b32.xlu1 %v431_v37, 256 }
 0x29f   : > { %437 = vbcast.lane.b32.xlu1 %v431_v37, 264 }
 0x30d   : > { %v434_v38 = vpop.permute.xlu1 %433 }
 0x30e   : > { %v439_v39 = vmul.f32 %v434_v38, %v243_v0 }
 0x310   : > { %441 = vst.msk [vmem:[%s242_s13] sm:$0xff] %vm245_vm0, %v439_v39 }
 0x311   : > { %v438_v40 = vpop.permute.xlu1 %437 }
 0x312   : > { %v440_v41 = vmul.f32 %v438_v40, %v877_v1 }
 0x314   : > { %442 = vst.msk [vmem:[%s242_s13 + $0x8] sm:$0xff] %vm245_vm0, %v440_v41 }
 0x315   : > { %669 = shalt.err (!%p666_p2)
}
 0x316   : > { %s670_s8 = scalar_lea.hbm %s906_s14, 256  ;;  %s674_s10 = scalar_lea.hbm %s957_s5, 512 }
 0x317   : > { %p671_p4 = scmp.ne.s32.totalorder %s906_s14, %s670_s8  ;;  %p675_p9 = scmp.lt.u32.totalorder %s906_s14, %s957_s5 }
 0x318   : > { %p676_p1 = scmp.lt.u32.totalorder %s674_s10, %s670_s8  ;;  %p678_p6 = scmp.lt.u32.totalorder %s670_s8, %s906_s14 }
 0x319   : > { %p672_p5 = pnand %p671_p4, %p964_p11 }
 0x31a   : > { %p677_p3 = por %p676_p1, %p675_p9 }
 0x31b   : > { %p673_p7 = pneg %p672_p5 }
 0x31c   : > { %p679_p12 = por %p678_p6, %p677_p3 }
 0x31e   : > { %p680_p13 = pnand %p679_p12, %p673_p7 }
 0x320   : > { %683 = shalt.err (!%p680_p13)
}
 0x321   : > { %s731_s26 = smov 128   ;;  %s732_s28 = smov 8  }
 0x322   : > { %571 = dma.vmem_to_hbm [thread:$0]  (%p964_p11), %s900_s17, 256, %s906_s14, %s444_s25, %s731_s26, %s731_s26, %s732_s28  }
 0x323 PF: > { %s472_s12 = sand.u32 1, %s710_s18   ;;  %p965_p8 = scmp.ne.s32.totalorder %s962_s6, 0 }
 0x324   : > { %p966_p10 = scmp.ge.s32.totalorder %s722_s21, 2  ;;  %s473_s15 = scalar_lea.sflag [#allocation4], %s472_s12 }
 0x326   : > { %p578_p0 = pnand %p966_p10, %p965_p8 }
 0x328   : > { %705 = dma.done.wait (!%p578_p0), %s473_s15, 256  }
 0x329   : > { %707 = vsyncadd (!%p578_p0), %s473_s15, 4294967040  ;;  %p18_p2 = scmp.ge.s32.totalorder %s788_s24, 4   ;;  %s967_s18 = smov %s714_s19 }
 0x32a   : > { %s968_s19 = smov %s718_s20  ;;  %s969_s20 = smov %s800_s27 }
 0x32b   : > { %s970_s21 = smov %s788_s24  ;;  %20 = sbr.rel (!%p18_p2) target bundleno = 5 (0x5), region = 85 }
 0x332   :  { %478 = vsyncpa [#allocation3], 1 }
 0x333   :  { %480 = vsyncpa [#allocation3 + $0x1], 1 }
 0x334   :  { %481 = vsyncpa [#allocation4], 1 }
 0x335   :  { %483 = vsyncpa [#allocation4 + $0x1], 1 }

</bundles_post_ra>
